<compile_context>
chip_gen: v6e
topology: v6e:2x2x1
jax: 0.10.0
libtpu: 0.0.40
codegen_flags: <defaults>
</compile_context>

<pallas_src>
import functools

import jax
import jax.numpy as jnp
from jax.experimental import pallas as pl
from jax.experimental.pallas import tpu as pltpu


def _round_up(v, m):
    return -(-v // m) * m


def _conv_kernel(x_ref, w_ref, b_ref, o_ref, *, nb, kk, tap_offsets, lw, act,
                 pre_extracted):
    """One grid step == a block of `nb` images.

    pre_extracted == False (s == 1, "wide conv" layout):
        x_ref : (nb, C1, Lp)   per-image row-major flattened padded image,
                               Lp = Hp*Wp + K - 1 (tail pad keeps the last
                               tap's lane slice in bounds).
        tap (kh,kw) -> lane slice [kh*Wp + kw, kh*Wp + kw + lw), lw = OH*Wp.
    pre_extracted == True  (s > 1, taps gathered in the wrapper):
        x_ref : (nb, KK, C1, lw)   with lw = OH*OW.
    w_ref : (KK, C2, C1)   tap-major weights (same (kh,kw) order).
    b_ref : (C2, 1)        f32 bias.
    o_ref : (nb, C2, lw)   f32, natively per-image NCHW layout.
    """
    for n in range(nb):
        acc = None
        for t in range(kk):
            if pre_extracted:
                piece = x_ref[n, t]                           # (C1, lw)
            else:
                off = tap_offsets[t]                          # static int
                piece = x_ref[n, :, off:off + lw]             # (C1, lw)
            part = jnp.dot(w_ref[t], piece,
                           preferred_element_type=jnp.float32)  # (C2, lw)
            acc = part if acc is None else acc + part
        out = acc + b_ref[...]                                # (C2,1) bcast
        if act:
            out = jnp.maximum(out, 0.0)
        o_ref[n] = out.astype(o_ref.dtype)


def conv_forward(x_nchw, weight_oihw, bias=None, *, k=3, s=1, p=0, g=1,
                 act=False, compute_dtype=None):
    """Matches Conv(c1, c2, k, s, p, g, bias=True, bn=False, act=act).forward.

    x_nchw:      (N, C1, H, W)   float32
    weight_oihw: (C2, C1, K, K)  float32 (PyTorch Conv2d layout)
    bias:        (C2,) or None
    compute_dtype: optional (e.g. jnp.bfloat16) — MXU input dtype; the
                   accumulation and output stay float32.
    returns      (N, C2, OH, OW) float32
    """
    assert g == 1, "TODO(synk): grouped convolution (g > 1) not implemented"

    n, c1, h, w = x_nchw.shape
    c2 = weight_oihw.shape[0]
    kk = k * k

    hp, wp = h + 2 * p, w + 2 * p
    oh = (hp - k) // s + 1
    ow = (wp - k) // s + 1

    cdt = (jnp.dtype(compute_dtype) if compute_dtype is not None
           else jnp.dtype(x_nchw.dtype))
    itemsize = cdt.itemsize

    # Stay in NCHW (channel-major) so the lane dimension is spatial, not C1.
    xp = x_nchw
    if p:
        xp = jnp.pad(xp, ((0, 0), (0, 0), (p, p), (p, p)))

    pre_extracted = (s != 1)
    lp = 0
    if not pre_extracted:
        # Wide-conv layout: flatten (Hp, Wp) row-major.  Every (kh, kw) tap
        # window over ALL output rows is one contiguous lane slice of length
        # OH*Wp; the K-1 junk columns at the end of each row are discarded in
        # the wrapper after the kernel.
        lw = oh * wp
        lp = hp * wp + (k - 1)
        x_in = xp.reshape(n, c1, hp * wp)
        if k > 1:
            x_in = jnp.pad(x_in, ((0, 0), (0, 0), (0, k - 1)))
        tap_offsets = tuple(kh * wp + kw for kh in range(k) for kw in range(k))
        x_img_bytes = _round_up(c1, 8) * _round_up(lp, 128) * itemsize
    else:
        # s > 1: hoist the strided tap extraction into the wrapper (XLA
        # strided slices) so the kernel never issues strided sublane loads.
        lw = oh * ow
        taps = []
        for kh in range(k):
            for kw in range(k):
                win = jax.lax.slice(
                    xp, (0, 0, kh, kw),
                    (n, c1, kh + (oh - 1) * s + 1, kw + (ow - 1) * s + 1),
                    (1, 1, s, s))
                taps.append(win.reshape(n, c1, lw))
        x_in = jnp.stack(taps, axis=1)            # (N, KK, C1, OH*OW)
        tap_offsets = tuple(range(kk))            # unused in this path
        x_img_bytes = kk * _round_up(c1, 8) * _round_up(lw, 128) * itemsize

    if compute_dtype is not None:
        x_in = x_in.astype(cdt)

    # Tap-major weights (KK, C2, C1), (kh, kw) order matching the kernel.
    w3 = jnp.transpose(weight_oihw, (2, 3, 0, 1)).reshape(kk, c2, c1).astype(cdt)
    if bias is None:
        bias = jnp.zeros((c2,), jnp.float32)
    b2 = bias.reshape(c2, 1).astype(jnp.float32)

    # ---- VMEM-budget-aware batch blocking, using PADDED (8,128) footprints.
    o_img_bytes = _round_up(c2, 8) * _round_up(lw, 128) * 4          # f32 out
    fixed_bytes = (kk * _round_up(c2, 8) * _round_up(c1, 128) * itemsize
                   + _round_up(c2, 8) * 128 * 4)                      # w + b
    try:
        phys_vmem = int(pltpu.get_tpu_info().vmem_capacity_bytes)
    except Exception:
        phys_vmem = 64 << 20                      # conservative: v7x per-TC
    # v7x (64 MiB) -> ~38 MiB budget; v5e/v6e (128 MiB) -> ~76 MiB budget.
    budget = min(int(phys_vmem * 0.6), 96 << 20)

    per_img = 2 * (x_img_bytes + o_img_bytes)     # double-buffered in + out
    nb = int(max(1, min(n, 8,
                        (budget // 2 - 2 * fixed_bytes) // max(per_img, 1))))
    n_pad = _round_up(n, nb)
    if n_pad != n:
        x_in = jnp.pad(x_in, ((0, n_pad - n),) + ((0, 0),) * (x_in.ndim - 1))

    need = nb * per_img + 2 * fixed_bytes
    vmem_limit = int(min(max(2 * need, 8 << 20), budget))

    kernel = functools.partial(
        _conv_kernel, nb=nb, kk=kk, tap_offsets=tap_offsets, lw=lw, act=act,
        pre_extracted=pre_extracted)

    if pre_extracted:
        x_spec = pl.BlockSpec((nb, kk, c1, lw), lambda b: (b, 0, 0, 0))
    else:
        x_spec = pl.BlockSpec((nb, c1, lp), lambda b: (b, 0, 0))

    cost = pl.CostEstimate(
        flops=2 * n_pad * kk * c2 * c1 * lw + 2 * n_pad * c2 * lw,
        transcendentals=0,
        bytes_accessed=int(x_in.size * itemsize + w3.size * itemsize
                           + b2.size * 4 + n_pad * c2 * lw * 4),
    )

    out = pl.pallas_call(
        kernel,
        out_shape=jax.ShapeDtypeStruct((n_pad, c2, lw), jnp.float32),
        grid_spec=pltpu.PrefetchScalarGridSpec(
            num_scalar_prefetch=0,
            grid=(n_pad // nb,),
            in_specs=[
                x_spec,
                # Weights / bias: constant block index -> resident in VMEM.
                pl.BlockSpec((kk, c2, c1), lambda b: (0, 0, 0)),
                pl.BlockSpec((c2, 1), lambda b: (0, 0)),
            ],
            out_specs=pl.BlockSpec((nb, c2, lw), lambda b: (b, 0, 0)),
        ),
        compiler_params=pltpu.CompilerParams(
            dimension_semantics=("parallel",),
            vmem_limit_bytes=vmem_limit,
        ),
        cost_estimate=cost,
    )(x_in, w3, b2)

    out = out[:n]
    if not pre_extracted:
        # (N, C2, OH*Wp) -> (N, C2, OH, Wp) -> drop the K-1 junk columns.
        out = out.reshape(n, c2, oh, wp)[..., :ow]
    else:
        out = out.reshape(n, c2, oh, ow)
    return out                                     # already NCHW — no transpose


if __name__ == "__main__":
    # Conv(c1=4, c2=8, k=3, ...) on a (2, 4, 16, 16) input.
    N, C1, H, W = 2, 4, 16, 16
    C2, K = 8, 3

    key = jax.random.PRNGKey(0)
    kx, kw_, kb = jax.random.split(key, 3)
    x = jax.random.normal(kx, (N, C1, H, W), dtype=jnp.float32)
    weight = jax.random.normal(kw_, (C2, C1, K, K), dtype=jnp.float32) * 0.1
    bias = jax.random.normal(kb, (C2,), dtype=jnp.float32) * 0.1

    def ref_conv(xv, wv, bv, s, p, act):
        y = jax.lax.conv_general_dilated(
            xv, wv, window_strides=(s, s), padding=[(p, p), (p, p)],
            dimension_numbers=("NCHW", "OIHW", "NCHW"),
        ) + bv[None, :, None, None]
        return jnp.maximum(y, 0.0) if act else y

    # 1) module defaults: k=3, s=1, p=0, bias, no activation.
    f1 = jax.jit(functools.partial(conv_forward, k=K, s=1, p=0, g=1, act=False))
    out1 = jax.block_until_ready(f1(x, weight, bias))
    ref1 = ref_conv(x, weight, bias, 1, 0, False)
    assert out1.shape == ref1.shape == (N, C2, H - K + 1, W - K + 1)
    assert jnp.allclose(out1, ref1, atol=1e-4, rtol=1e-4)

    # 2) fused ReLU epilogue (act=True).
    f2 = jax.jit(functools.partial(conv_forward, k=K, s=1, p=0, g=1, act=True))
    out2 = jax.block_until_ready(f2(x, weight, bias))
    assert jnp.allclose(out2, ref_conv(x, weight, bias, 1, 0, True),
                        atol=1e-4, rtol=1e-4)

    # 3) strided + padded conv (s=2, p=1) — wrapper-side tap-extraction path.
    f3 = jax.jit(functools.partial(conv_forward, k=K, s=2, p=1, g=1, act=False))
    out3 = jax.block_until_ready(f3(x, weight, bias))
    ref3 = ref_conv(x, weight, bias, 2, 1, False)
    assert out3.shape == ref3.shape
    assert jnp.allclose(out3, ref3, atol=1e-4, rtol=1e-4)

    # 4) optional bf16 MXU path (f32 accumulation), loose tolerance.
    f4 = jax.jit(functools.partial(conv_forward, k=K, s=1, p=0, g=1, act=False,
                                   compute_dtype=jnp.bfloat16))
    out4 = jax.block_until_ready(f4(x, weight, bias))
    assert jnp.allclose(out4, ref1, atol=2.5e-1, rtol=2.5e-2)

    print("KERNEL_OK")
</pallas_src>

<mosaic_0001>
module attributes {stable_mosaic.version = 11 : i64} {
  func.func @_conv_kernel(%arg0: i32, %arg1: memref<2x4x258xf32, #tpu.memory_space<vmem>>, %arg2: memref<9x8x4xf32, #tpu.memory_space<vmem>>, %arg3: memref<8x1xf32, #tpu.memory_space<vmem>>, %arg4: memref<2x8x224xf32, #tpu.memory_space<vmem>>) attributes {dimension_semantics = [#tpu.dimension_semantics<parallel>], iteration_bounds = array<i64: 1>, scalar_prefetch = 0 : i64, scratch_operands = 0 : i64, tpu.core_type = #tpu.core_type<tc>, window_params = [{transform_indices = @transform_0, window_bounds = array<i64: 2, 4, 258>}, {pipeline_mode = #tpu.pipeline_mode<synchronous>, transform_indices = @transform_1, window_bounds = array<i64: 9, 8, 4>}, {pipeline_mode = #tpu.pipeline_mode<synchronous>, transform_indices = @transform_2, window_bounds = array<i64: 8, 1>}, {transform_indices = @transform_3, window_bounds = array<i64: 2, 8, 224>}]} {
    %c0 = arith.constant 0 : index
    %c0_0 = arith.constant 0 : index
    %c0_1 = arith.constant 0 : index
    %0 = vector.load %arg1[%c0, %c0_0, %c0_1] : memref<2x4x258xf32, #tpu.memory_space<vmem>>, vector<1x4x224xf32>
    %1 = vector.shape_cast %0 : vector<1x4x224xf32> to vector<4x224xf32>
    %c0_2 = arith.constant 0 : index
    %c0_3 = arith.constant 0 : index
    %c0_4 = arith.constant 0 : index
    %2 = vector.load %arg2[%c0_2, %c0_3, %c0_4] : memref<9x8x4xf32, #tpu.memory_space<vmem>>, vector<1x8x4xf32>
    %3 = vector.shape_cast %2 : vector<1x8x4xf32> to vector<8x4xf32>
    %cst = arith.constant dense<0.000000e+00> : vector<8x224xf32>
    %4 = tpu.matmul %3, %1, %cst {dimension_numbers = #tpu.dot_dimension_numbers<[1], [0], [0], [1], [0, 0, 1, 1], [], []>} : vector<8x4xf32>, vector<4x224xf32>, vector<8x224xf32> -> vector<8x224xf32>
    %c0_5 = arith.constant 0 : index
    %c0_6 = arith.constant 0 : index
    %c1 = arith.constant 1 : index
    %5 = vector.load %arg1[%c0_5, %c0_6, %c1] : memref<2x4x258xf32, #tpu.memory_space<vmem>>, vector<1x4x224xf32>
    %6 = vector.shape_cast %5 : vector<1x4x224xf32> to vector<4x224xf32>
    %c1_7 = arith.constant 1 : index
    %c0_8 = arith.constant 0 : index
    %c0_9 = arith.constant 0 : index
    %7 = vector.load %arg2[%c1_7, %c0_8, %c0_9] : memref<9x8x4xf32, #tpu.memory_space<vmem>>, vector<1x8x4xf32>
    %8 = vector.shape_cast %7 : vector<1x8x4xf32> to vector<8x4xf32>
    %cst_10 = arith.constant dense<0.000000e+00> : vector<8x224xf32>
    %9 = tpu.matmul %8, %6, %cst_10 {dimension_numbers = #tpu.dot_dimension_numbers<[1], [0], [0], [1], [0, 0, 1, 1], [], []>} : vector<8x4xf32>, vector<4x224xf32>, vector<8x224xf32> -> vector<8x224xf32>
    %10 = arith.addf %4, %9 : vector<8x224xf32>
    %c0_11 = arith.constant 0 : index
    %c0_12 = arith.constant 0 : index
    %c2 = arith.constant 2 : index
    %11 = vector.load %arg1[%c0_11, %c0_12, %c2] : memref<2x4x258xf32, #tpu.memory_space<vmem>>, vector<1x4x224xf32>
    %12 = vector.shape_cast %11 : vector<1x4x224xf32> to vector<4x224xf32>
    %c2_13 = arith.constant 2 : index
    %c0_14 = arith.constant 0 : index
    %c0_15 = arith.constant 0 : index
    %13 = vector.load %arg2[%c2_13, %c0_14, %c0_15] : memref<9x8x4xf32, #tpu.memory_space<vmem>>, vector<1x8x4xf32>
    %14 = vector.shape_cast %13 : vector<1x8x4xf32> to vector<8x4xf32>
    %cst_16 = arith.constant dense<0.000000e+00> : vector<8x224xf32>
    %15 = tpu.matmul %14, %12, %cst_16 {dimension_numbers = #tpu.dot_dimension_numbers<[1], [0], [0], [1], [0, 0, 1, 1], [], []>} : vector<8x4xf32>, vector<4x224xf32>, vector<8x224xf32> -> vector<8x224xf32>
    %16 = arith.addf %10, %15 : vector<8x224xf32>
    %c0_17 = arith.constant 0 : index
    %c0_18 = arith.constant 0 : index
    %c16 = arith.constant 16 : index
    %17 = vector.load %arg1[%c0_17, %c0_18, %c16] : memref<2x4x258xf32, #tpu.memory_space<vmem>>, vector<1x4x224xf32>
    %18 = vector.shape_cast %17 : vector<1x4x224xf32> to vector<4x224xf32>
    %c3 = arith.constant 3 : index
    %c0_19 = arith.constant 0 : index
    %c0_20 = arith.constant 0 : index
    %19 = vector.load %arg2[%c3, %c0_19, %c0_20] : memref<9x8x4xf32, #tpu.memory_space<vmem>>, vector<1x8x4xf32>
    %20 = vector.shape_cast %19 : vector<1x8x4xf32> to vector<8x4xf32>
    %cst_21 = arith.constant dense<0.000000e+00> : vector<8x224xf32>
    %21 = tpu.matmul %20, %18, %cst_21 {dimension_numbers = #tpu.dot_dimension_numbers<[1], [0], [0], [1], [0, 0, 1, 1], [], []>} : vector<8x4xf32>, vector<4x224xf32>, vector<8x224xf32> -> vector<8x224xf32>
    %22 = arith.addf %16, %21 : vector<8x224xf32>
    %c0_22 = arith.constant 0 : index
    %c0_23 = arith.constant 0 : index
    %c17 = arith.constant 17 : index
    %23 = vector.load %arg1[%c0_22, %c0_23, %c17] : memref<2x4x258xf32, #tpu.memory_space<vmem>>, vector<1x4x224xf32>
    %24 = vector.shape_cast %23 : vector<1x4x224xf32> to vector<4x224xf32>
    %c4 = arith.constant 4 : index
    %c0_24 = arith.constant 0 : index
    %c0_25 = arith.constant 0 : index
    %25 = vector.load %arg2[%c4, %c0_24, %c0_25] : memref<9x8x4xf32, #tpu.memory_space<vmem>>, vector<1x8x4xf32>
    %26 = vector.shape_cast %25 : vector<1x8x4xf32> to vector<8x4xf32>
    %cst_26 = arith.constant dense<0.000000e+00> : vector<8x224xf32>
    %27 = tpu.matmul %26, %24, %cst_26 {dimension_numbers = #tpu.dot_dimension_numbers<[1], [0], [0], [1], [0, 0, 1, 1], [], []>} : vector<8x4xf32>, vector<4x224xf32>, vector<8x224xf32> -> vector<8x224xf32>
    %28 = arith.addf %22, %27 : vector<8x224xf32>
    %c0_27 = arith.constant 0 : index
    %c0_28 = arith.constant 0 : index
    %c18 = arith.constant 18 : index
    %29 = vector.load %arg1[%c0_27, %c0_28, %c18] : memref<2x4x258xf32, #tpu.memory_space<vmem>>, vector<1x4x224xf32>
    %30 = vector.shape_cast %29 : vector<1x4x224xf32> to vector<4x224xf32>
    %c5 = arith.constant 5 : index
    %c0_29 = arith.constant 0 : index
    %c0_30 = arith.constant 0 : index
    %31 = vector.load %arg2[%c5, %c0_29, %c0_30] : memref<9x8x4xf32, #tpu.memory_space<vmem>>, vector<1x8x4xf32>
    %32 = vector.shape_cast %31 : vector<1x8x4xf32> to vector<8x4xf32>
    %cst_31 = arith.constant dense<0.000000e+00> : vector<8x224xf32>
    %33 = tpu.matmul %32, %30, %cst_31 {dimension_numbers = #tpu.dot_dimension_numbers<[1], [0], [0], [1], [0, 0, 1, 1], [], []>} : vector<8x4xf32>, vector<4x224xf32>, vector<8x224xf32> -> vector<8x224xf32>
    %34 = arith.addf %28, %33 : vector<8x224xf32>
    %c0_32 = arith.constant 0 : index
    %c0_33 = arith.constant 0 : index
    %c32 = arith.constant 32 : index
    %35 = vector.load %arg1[%c0_32, %c0_33, %c32] : memref<2x4x258xf32, #tpu.memory_space<vmem>>, vector<1x4x224xf32>
    %36 = vector.shape_cast %35 : vector<1x4x224xf32> to vector<4x224xf32>
    %c6 = arith.constant 6 : index
    %c0_34 = arith.constant 0 : index
    %c0_35 = arith.constant 0 : index
    %37 = vector.load %arg2[%c6, %c0_34, %c0_35] : memref<9x8x4xf32, #tpu.memory_space<vmem>>, vector<1x8x4xf32>
    %38 = vector.shape_cast %37 : vector<1x8x4xf32> to vector<8x4xf32>
    %cst_36 = arith.constant dense<0.000000e+00> : vector<8x224xf32>
    %39 = tpu.matmul %38, %36, %cst_36 {dimension_numbers = #tpu.dot_dimension_numbers<[1], [0], [0], [1], [0, 0, 1, 1], [], []>} : vector<8x4xf32>, vector<4x224xf32>, vector<8x224xf32> -> vector<8x224xf32>
    %40 = arith.addf %34, %39 : vector<8x224xf32>
    %c0_37 = arith.constant 0 : index
    %c0_38 = arith.constant 0 : index
    %c33 = arith.constant 33 : index
    %41 = vector.load %arg1[%c0_37, %c0_38, %c33] : memref<2x4x258xf32, #tpu.memory_space<vmem>>, vector<1x4x224xf32>
    %42 = vector.shape_cast %41 : vector<1x4x224xf32> to vector<4x224xf32>
    %c7 = arith.constant 7 : index
    %c0_39 = arith.constant 0 : index
    %c0_40 = arith.constant 0 : index
    %43 = vector.load %arg2[%c7, %c0_39, %c0_40] : memref<9x8x4xf32, #tpu.memory_space<vmem>>, vector<1x8x4xf32>
    %44 = vector.shape_cast %43 : vector<1x8x4xf32> to vector<8x4xf32>
    %cst_41 = arith.constant dense<0.000000e+00> : vector<8x224xf32>
    %45 = tpu.matmul %44, %42, %cst_41 {dimension_numbers = #tpu.dot_dimension_numbers<[1], [0], [0], [1], [0, 0, 1, 1], [], []>} : vector<8x4xf32>, vector<4x224xf32>, vector<8x224xf32> -> vector<8x224xf32>
    %46 = arith.addf %40, %45 : vector<8x224xf32>
    %c0_42 = arith.constant 0 : index
    %c0_43 = arith.constant 0 : index
    %c34 = arith.constant 34 : index
    %47 = vector.load %arg1[%c0_42, %c0_43, %c34] : memref<2x4x258xf32, #tpu.memory_space<vmem>>, vector<1x4x224xf32>
    %48 = vector.shape_cast %47 : vector<1x4x224xf32> to vector<4x224xf32>
    %c8 = arith.constant 8 : index
    %c0_44 = arith.constant 0 : index
    %c0_45 = arith.constant 0 : index
    %49 = vector.load %arg2[%c8, %c0_44, %c0_45] : memref<9x8x4xf32, #tpu.memory_space<vmem>>, vector<1x8x4xf32>
    %50 = vector.shape_cast %49 : vector<1x8x4xf32> to vector<8x4xf32>
    %cst_46 = arith.constant dense<0.000000e+00> : vector<8x224xf32>
    %51 = tpu.matmul %50, %48, %cst_46 {dimension_numbers = #tpu.dot_dimension_numbers<[1], [0], [0], [1], [0, 0, 1, 1], [], []>} : vector<8x4xf32>, vector<4x224xf32>, vector<8x224xf32> -> vector<8x224xf32>
    %52 = arith.addf %46, %51 : vector<8x224xf32>
    %c0_47 = arith.constant 0 : index
    %c0_48 = arith.constant 0 : index
    %53 = vector.load %arg3[%c0_47, %c0_48] : memref<8x1xf32, #tpu.memory_space<vmem>>, vector<8x1xf32>
    %54 = vector.broadcast %53 : vector<8x1xf32> to vector<8x224xf32>
    %55 = arith.addf %52, %54 : vector<8x224xf32>
    %c0_49 = arith.constant 0 : index
    %c0_50 = arith.constant 0 : index
    %c0_51 = arith.constant 0 : index
    %56 = vector.load %arg4[%c0_49, %c0_50, %c0_51] : memref<2x8x224xf32, #tpu.memory_space<vmem>>, vector<1x8x224xf32>
    %57 = vector.shape_cast %56 : vector<1x8x224xf32> to vector<8x224xf32>
    %58 = vector.shape_cast %55 : vector<8x224xf32> to vector<1x8x224xf32>
    tpu.vector_store %arg4[%c0_49, %c0_50, %c0_51], %58 {strides = array<i32>} : memref<2x8x224xf32, #tpu.memory_space<vmem>>, vector<1x8x224xf32>,
    %c1_52 = arith.constant 1 : index
    %c0_53 = arith.constant 0 : index
    %c0_54 = arith.constant 0 : index
    %59 = vector.load %arg1[%c1_52, %c0_53, %c0_54] : memref<2x4x258xf32, #tpu.memory_space<vmem>>, vector<1x4x224xf32>
    %60 = vector.shape_cast %59 : vector<1x4x224xf32> to vector<4x224xf32>
    %c0_55 = arith.constant 0 : index
    %c0_56 = arith.constant 0 : index
    %c0_57 = arith.constant 0 : index
    %61 = vector.load %arg2[%c0_55, %c0_56, %c0_57] : memref<9x8x4xf32, #tpu.memory_space<vmem>>, vector<1x8x4xf32>
    %62 = vector.shape_cast %61 : vector<1x8x4xf32> to vector<8x4xf32>
    %cst_58 = arith.constant dense<0.000000e+00> : vector<8x224xf32>
    %63 = tpu.matmul %62, %60, %cst_58 {dimension_numbers = #tpu.dot_dimension_numbers<[1], [0], [0], [1], [0, 0, 1, 1], [], []>} : vector<8x4xf32>, vector<4x224xf32>, vector<8x224xf32> -> vector<8x224xf32>
    %c1_59 = arith.constant 1 : index
    %c0_60 = arith.constant 0 : index
    %c1_61 = arith.constant 1 : index
    %64 = vector.load %arg1[%c1_59, %c0_60, %c1_61] : memref<2x4x258xf32, #tpu.memory_space<vmem>>, vector<1x4x224xf32>
    %65 = vector.shape_cast %64 : vector<1x4x224xf32> to vector<4x224xf32>
    %c1_62 = arith.constant 1 : index
    %c0_63 = arith.constant 0 : index
    %c0_64 = arith.constant 0 : index
    %66 = vector.load %arg2[%c1_62, %c0_63, %c0_64] : memref<9x8x4xf32, #tpu.memory_space<vmem>>, vector<1x8x4xf32>
    %67 = vector.shape_cast %66 : vector<1x8x4xf32> to vector<8x4xf32>
    %cst_65 = arith.constant dense<0.000000e+00> : vector<8x224xf32>
    %68 = tpu.matmul %67, %65, %cst_65 {dimension_numbers = #tpu.dot_dimension_numbers<[1], [0], [0], [1], [0, 0, 1, 1], [], []>} : vector<8x4xf32>, vector<4x224xf32>, vector<8x224xf32> -> vector<8x224xf32>
    %69 = arith.addf %63, %68 : vector<8x224xf32>
    %c1_66 = arith.constant 1 : index
    %c0_67 = arith.constant 0 : index
    %c2_68 = arith.constant 2 : index
    %70 = vector.load %arg1[%c1_66, %c0_67, %c2_68] : memref<2x4x258xf32, #tpu.memory_space<vmem>>, vector<1x4x224xf32>
    %71 = vector.shape_cast %70 : vector<1x4x224xf32> to vector<4x224xf32>
    %c2_69 = arith.constant 2 : index
    %c0_70 = arith.constant 0 : index
    %c0_71 = arith.constant 0 : index
    %72 = vector.load %arg2[%c2_69, %c0_70, %c0_71] : memref<9x8x4xf32, #tpu.memory_space<vmem>>, vector<1x8x4xf32>
    %73 = vector.shape_cast %72 : vector<1x8x4xf32> to vector<8x4xf32>
    %cst_72 = arith.constant dense<0.000000e+00> : vector<8x224xf32>
    %74 = tpu.matmul %73, %71, %cst_72 {dimension_numbers = #tpu.dot_dimension_numbers<[1], [0], [0], [1], [0, 0, 1, 1], [], []>} : vector<8x4xf32>, vector<4x224xf32>, vector<8x224xf32> -> vector<8x224xf32>
    %75 = arith.addf %69, %74 : vector<8x224xf32>
    %c1_73 = arith.constant 1 : index
    %c0_74 = arith.constant 0 : index
    %c16_75 = arith.constant 16 : index
    %76 = vector.load %arg1[%c1_73, %c0_74, %c16_75] : memref<2x4x258xf32, #tpu.memory_space<vmem>>, vector<1x4x224xf32>
    %77 = vector.shape_cast %76 : vector<1x4x224xf32> to vector<4x224xf32>
    %c3_76 = arith.constant 3 : index
    %c0_77 = arith.constant 0 : index
    %c0_78 = arith.constant 0 : index
    %78 = vector.load %arg2[%c3_76, %c0_77, %c0_78] : memref<9x8x4xf32, #tpu.memory_space<vmem>>, vector<1x8x4xf32>
    %79 = vector.shape_cast %78 : vector<1x8x4xf32> to vector<8x4xf32>
    %cst_79 = arith.constant dense<0.000000e+00> : vector<8x224xf32>
    %80 = tpu.matmul %79, %77, %cst_79 {dimension_numbers = #tpu.dot_dimension_numbers<[1], [0], [0], [1], [0, 0, 1, 1], [], []>} : vector<8x4xf32>, vector<4x224xf32>, vector<8x224xf32> -> vector<8x224xf32>
    %81 = arith.addf %75, %80 : vector<8x224xf32>
    %c1_80 = arith.constant 1 : index
    %c0_81 = arith.constant 0 : index
    %c17_82 = arith.constant 17 : index
    %82 = vector.load %arg1[%c1_80, %c0_81, %c17_82] : memref<2x4x258xf32, #tpu.memory_space<vmem>>, vector<1x4x224xf32>
    %83 = vector.shape_cast %82 : vector<1x4x224xf32> to vector<4x224xf32>
    %c4_83 = arith.constant 4 : index
    %c0_84 = arith.constant 0 : index
    %c0_85 = arith.constant 0 : index
    %84 = vector.load %arg2[%c4_83, %c0_84, %c0_85] : memref<9x8x4xf32, #tpu.memory_space<vmem>>, vector<1x8x4xf32>
    %85 = vector.shape_cast %84 : vector<1x8x4xf32> to vector<8x4xf32>
    %cst_86 = arith.constant dense<0.000000e+00> : vector<8x224xf32>
    %86 = tpu.matmul %85, %83, %cst_86 {dimension_numbers = #tpu.dot_dimension_numbers<[1], [0], [0], [1], [0, 0, 1, 1], [], []>} : vector<8x4xf32>, vector<4x224xf32>, vector<8x224xf32> -> vector<8x224xf32>
    %87 = arith.addf %81, %86 : vector<8x224xf32>
    %c1_87 = arith.constant 1 : index
    %c0_88 = arith.constant 0 : index
    %c18_89 = arith.constant 18 : index
    %88 = vector.load %arg1[%c1_87, %c0_88, %c18_89] : memref<2x4x258xf32, #tpu.memory_space<vmem>>, vector<1x4x224xf32>
    %89 = vector.shape_cast %88 : vector<1x4x224xf32> to vector<4x224xf32>
    %c5_90 = arith.constant 5 : index
    %c0_91 = arith.constant 0 : index
    %c0_92 = arith.constant 0 : index
    %90 = vector.load %arg2[%c5_90, %c0_91, %c0_92] : memref<9x8x4xf32, #tpu.memory_space<vmem>>, vector<1x8x4xf32>
    %91 = vector.shape_cast %90 : vector<1x8x4xf32> to vector<8x4xf32>
    %cst_93 = arith.constant dense<0.000000e+00> : vector<8x224xf32>
    %92 = tpu.matmul %91, %89, %cst_93 {dimension_numbers = #tpu.dot_dimension_numbers<[1], [0], [0], [1], [0, 0, 1, 1], [], []>} : vector<8x4xf32>, vector<4x224xf32>, vector<8x224xf32> -> vector<8x224xf32>
    %93 = arith.addf %87, %92 : vector<8x224xf32>
    %c1_94 = arith.constant 1 : index
    %c0_95 = arith.constant 0 : index
    %c32_96 = arith.constant 32 : index
    %94 = vector.load %arg1[%c1_94, %c0_95, %c32_96] : memref<2x4x258xf32, #tpu.memory_space<vmem>>, vector<1x4x224xf32>
    %95 = vector.shape_cast %94 : vector<1x4x224xf32> to vector<4x224xf32>
    %c6_97 = arith.constant 6 : index
    %c0_98 = arith.constant 0 : index
    %c0_99 = arith.constant 0 : index
    %96 = vector.load %arg2[%c6_97, %c0_98, %c0_99] : memref<9x8x4xf32, #tpu.memory_space<vmem>>, vector<1x8x4xf32>
    %97 = vector.shape_cast %96 : vector<1x8x4xf32> to vector<8x4xf32>
    %cst_100 = arith.constant dense<0.000000e+00> : vector<8x224xf32>
    %98 = tpu.matmul %97, %95, %cst_100 {dimension_numbers = #tpu.dot_dimension_numbers<[1], [0], [0], [1], [0, 0, 1, 1], [], []>} : vector<8x4xf32>, vector<4x224xf32>, vector<8x224xf32> -> vector<8x224xf32>
    %99 = arith.addf %93, %98 : vector<8x224xf32>
    %c1_101 = arith.constant 1 : index
    %c0_102 = arith.constant 0 : index
    %c33_103 = arith.constant 33 : index
    %100 = vector.load %arg1[%c1_101, %c0_102, %c33_103] : memref<2x4x258xf32, #tpu.memory_space<vmem>>, vector<1x4x224xf32>
    %101 = vector.shape_cast %100 : vector<1x4x224xf32> to vector<4x224xf32>
    %c7_104 = arith.constant 7 : index
    %c0_105 = arith.constant 0 : index
    %c0_106 = arith.constant 0 : index
    %102 = vector.load %arg2[%c7_104, %c0_105, %c0_106] : memref<9x8x4xf32, #tpu.memory_space<vmem>>, vector<1x8x4xf32>
    %103 = vector.shape_cast %102 : vector<1x8x4xf32> to vector<8x4xf32>
    %cst_107 = arith.constant dense<0.000000e+00> : vector<8x224xf32>
    %104 = tpu.matmul %103, %101, %cst_107 {dimension_numbers = #tpu.dot_dimension_numbers<[1], [0], [0], [1], [0, 0, 1, 1], [], []>} : vector<8x4xf32>, vector<4x224xf32>, vector<8x224xf32> -> vector<8x224xf32>
    %105 = arith.addf %99, %104 : vector<8x224xf32>
    %c1_108 = arith.constant 1 : index
    %c0_109 = arith.constant 0 : index
    %c34_110 = arith.constant 34 : index
    %106 = vector.load %arg1[%c1_108, %c0_109, %c34_110] : memref<2x4x258xf32, #tpu.memory_space<vmem>>, vector<1x4x224xf32>
    %107 = vector.shape_cast %106 : vector<1x4x224xf32> to vector<4x224xf32>
    %c8_111 = arith.constant 8 : index
    %c0_112 = arith.constant 0 : index
    %c0_113 = arith.constant 0 : index
    %108 = vector.load %arg2[%c8_111, %c0_112, %c0_113] : memref<9x8x4xf32, #tpu.memory_space<vmem>>, vector<1x8x4xf32>
    %109 = vector.shape_cast %108 : vector<1x8x4xf32> to vector<8x4xf32>
    %cst_114 = arith.constant dense<0.000000e+00> : vector<8x224xf32>
    %110 = tpu.matmul %109, %107, %cst_114 {dimension_numbers = #tpu.dot_dimension_numbers<[1], [0], [0], [1], [0, 0, 1, 1], [], []>} : vector<8x4xf32>, vector<4x224xf32>, vector<8x224xf32> -> vector<8x224xf32>
    %111 = arith.addf %105, %110 : vector<8x224xf32>
    %c0_115 = arith.constant 0 : index
    %c0_116 = arith.constant 0 : index
    %112 = vector.load %arg3[%c0_115, %c0_116] : memref<8x1xf32, #tpu.memory_space<vmem>>, vector<8x1xf32>
    %113 = vector.broadcast %112 : vector<8x1xf32> to vector<8x224xf32>
    %114 = arith.addf %111, %113 : vector<8x224xf32>
    %c1_117 = arith.constant 1 : index
    %c0_118 = arith.constant 0 : index
    %c0_119 = arith.constant 0 : index
    %115 = vector.load %arg4[%c1_117, %c0_118, %c0_119] : memref<2x8x224xf32, #tpu.memory_space<vmem>>, vector<1x8x224xf32>
    %116 = vector.shape_cast %115 : vector<1x8x224xf32> to vector<8x224xf32>
    %117 = vector.shape_cast %114 : vector<8x224xf32> to vector<1x8x224xf32>
    tpu.vector_store %arg4[%c1_117, %c0_118, %c0_119], %117 {strides = array<i32>} : memref<2x8x224xf32, #tpu.memory_space<vmem>>, vector<1x8x224xf32>,
    return
  }
  func.func @transform_0(%arg0: i32) -> (i32, i32, i32) {
    %c0_i32 = arith.constant 0 : i32
    %c0_i32_0 = arith.constant 0 : i32
    %c0_i32_1 = arith.constant 0 : i32
    return %arg0, %c0_i32, %c0_i32_0 : i32, i32, i32
  }
  func.func @transform_1(%arg0: i32) -> (i32, i32, i32) {
    %c0_i32 = arith.constant 0 : i32
    %c0_i32_0 = arith.constant 0 : i32
    %c0_i32_1 = arith.constant 0 : i32
    %c0_i32_2 = arith.constant 0 : i32
    return %c0_i32, %c0_i32_0, %c0_i32_1 : i32, i32, i32
  }
  func.func @transform_2(%arg0: i32) -> (i32, i32) {
    %c0_i32 = arith.constant 0 : i32
    %c0_i32_0 = arith.constant 0 : i32
    %c0_i32_1 = arith.constant 0 : i32
    return %c0_i32, %c0_i32_0 : i32, i32
  }
  func.func @transform_3(%arg0: i32) -> (i32, i32, i32) {
    %c0_i32 = arith.constant 0 : i32
    %c0_i32_0 = arith.constant 0 : i32
    %c0_i32_1 = arith.constant 0 : i32
    return %arg0, %c0_i32, %c0_i32_0 : i32, i32, i32
  }
}

</mosaic_0001>

<bundles_post_ra>
// kernel: conv_forward.1
= control target key start
LH: loop header
LB: loop body
LE: loop exit
PB: predicated region body
PF: predicated region fallthrough
CT: control target
= control target key end

     0   :  { %v1752_v1 = vmov 0.0   ;;  %s1753_s14 = smov 126   ;;  %s1754_s15 = smov 127   ;;  %vm30_vm0 = vcmask 1043456   ;;  %vm26_vm1 = vcmask 31744   ;;  %v1761_v9 = vmov 0   ;;  %s2016_s0 = inlined_call_operand.vmem [shape: f32[2,4,258], index: 0, kind: input, shape index: {}]   ;;  %s2017_s1 = inlined_call_operand.vmem [shape: f32[9,8,4], index: 1, kind: input, shape index: {}]   ;;  %s2018_s2 = inlined_call_operand.vmem [shape: f32[8,1], index: 2, kind: input, shape index: {}]   ;;  %s2019_s3 = inlined_call_operand.vmem [shape: f32[2,8,224], index: 3, kind: output, shape index: {}]  }
   0x1   :  { %v184_v0 = vld [vmem:[%s2016_s0] sm:$0xff]  ;;  %99 = vmatprep.mubr.f32.mxu0 %v1752_v1  ;;  %177 = vmatprep.mubr.f32.mxu1 %v1752_v1  ;;  %s1755_s18 = smov 112   ;;  %s1756_s19 = smov 111   ;;  %v640_v4 = vld [vmem:[%s2016_s0 + $0x8] sm:$0xf]  ;;  %v1814_v6 = vld [vmem:[%s2016_s0 + $0xc] sm:$0xff] }
   0x2   :  { %189 = vrot.lane.b32.xlu1 %v184_v0, %s1753_s14  ;;  %v188_v2 = vcombine.high %v184_v0, %v184_v0  ;;  %20 = vrot.lane.b32.xlu0 %v184_v0, %s1754_s15  ;;  %v1793_v3 = vld [vmem:[%s2017_s1] sm:$0xff]  ;;  %s1757_s20 = smov 110   ;;  %s1758_s21 = smov 96   ;;  %v736_v5 = vld [vmem:[%s2016_s0 + $0x8] sm:$0xf]  ;;  %v1820_v7 = vcombine.high %v1814_v6, %v1814_v6  ;;  %vm24_vm2 = vcmask 1039360  }
   0x3   :  { %s1759_s24 = smov 95   ;;  %s1760_s25 = smov 94   ;;  %v1725_v8 = vld [vmem:[%s2016_s0 + $0x14] sm:$0xf]  ;;  %1748 = vset.pattern.permute.xlu0 %v1761_v9  ;;  %1749 = vset.pattern.permute.xlu1 %v1761_v9  ;;  %v831_v11 = vld [vmem:[%s2018_s2] sm:$0xff]  ;;  %vm193_vm3 = vcmask 1031168  }
   0x4   :  { %1660 = vmatprep.subr.msk.mxu1 %vm30_vm0, %v188_v2  ;;  %v1731_v10 = vld [vmem:[%s2016_s0 + $0x14] sm:$0xf]  ;;  %v1860_v16 = vld [vmem:[%s2017_s1 + $0x8] sm:$0xff]  ;;  %vm284_vm4 = vcmask 916480   ;;  %v1879_v22 = vld [vmem:[%s2017_s1 + $0x18] sm:$0xff]  ;;  %vm375_vm5 = vcmask 908288  }
   0x5   :  { %1661 = vmatpush1.msk.msra.mxu1 %vm30_vm0, %v184_v0  ;;  %v1874_v21 = vld [vmem:[%s2017_s1 + $0x10] sm:$0xff]  ;;  %v1892_v26 = vld [vmem:[%s2017_s1 + $0x20] sm:$0xff]  ;;  %vm466_vm6 = vcmask 900096   ;;  %v1903_v30 = vld [vmem:[%s2017_s1 + $0x28] sm:$0xff]  ;;  %vm557_vm7 = vcmask 785408   ;;  %vm652_vm8 = vcmask 777216  }
   0x6   :  { %191 = vrot.lane.b32.xlu1 %v188_v2, %s1753_s14  ;;  %22 = vrot.lane.b32.xlu0 %v188_v2, %s1754_s15  ;;  %v1914_v34 = vld [vmem:[%s2017_s1 + $0x30] sm:$0xff]  ;;  %v1928_v41 = vld [vmem:[%s2017_s1 + $0x38] sm:$0xff]  ;;  %vm748_vm9 = vcmask 769024  }
   0x7   :  { %1662 = vmatmul.mubr.msk.f32.vlgmr.msra.gmra.mxu1 %vm26_vm1, %v1793_v3  ;;  %v1940_v47 = vld [vmem:[%s2017_s1 + $0x40] sm:$0xff] }
   0x8   :  { %357 = vmatprep.mubr.f32.mxu1 %v1752_v1 }
   0xa   :  { %282 = vrot.lane.b32.xlu1 %v188_v2, %s1755_s18  ;;  %280 = vrot.lane.b32.xlu0 %v184_v0, %s1755_s18 }
   0xe   :  { %373 = vrot.lane.b32.xlu1 %v188_v2, %s1756_s19  ;;  %371 = vrot.lane.b32.xlu0 %v184_v0, %s1756_s19 }
  0x12   :  { %464 = vrot.lane.b32.xlu1 %v188_v2, %s1757_s20  ;;  %462 = vrot.lane.b32.xlu0 %v184_v0, %s1757_s20 }
  0x16   :  { %555 = vrot.lane.b32.xlu1 %v188_v2, %s1758_s21  ;;  %553 = vrot.lane.b32.xlu0 %v184_v0, %s1758_s21 }
  0x1a   :  { %650 = vrot.lane.b32.xlu1 %v640_v4, %s1759_s24  ;;  %648 = vrot.lane.b32.xlu0 %v188_v2, %s1759_s24 }
  0x1e   :  { %744 = vrot.lane.b32.xlu1 %v188_v2, %s1760_s25  ;;  %646 = vrot.lane.b32.xlu0 %v184_v0, %s1759_s24 }
  0x22   :  { %742 = vrot.lane.b32.xlu1 %v184_v0, %s1760_s25  ;;  %746 = vrot.lane.b32.xlu0 %v736_v5, %s1760_s25 }
  0x26   :  { %849 = vrot.lane.b32.xlu1 %v1820_v7, %s1754_s15  ;;  %847 = vrot.lane.b32.xlu0 %v1814_v6, %s1754_s15 }
  0x2a   :  { %1014 = vrot.lane.b32.xlu1 %v1820_v7, %s1753_s14  ;;  %1012 = vrot.lane.b32.xlu0 %v1814_v6, %s1753_s14 }
  0x2e   :  { %1103 = vrot.lane.b32.xlu1 %v1820_v7, %s1755_s18  ;;  %1101 = vrot.lane.b32.xlu0 %v1814_v6, %s1755_s18 }
  0x32   :  { %1192 = vrot.lane.b32.xlu1 %v1820_v7, %s1756_s19  ;;  %1190 = vrot.lane.b32.xlu0 %v1814_v6, %s1756_s19 }
  0x36   :  { %1281 = vrot.lane.b32.xlu1 %v1820_v7, %s1757_s20  ;;  %1279 = vrot.lane.b32.xlu0 %v1814_v6, %s1757_s20 }
  0x3a   :  { %1370 = vrot.lane.b32.xlu1 %v1820_v7, %s1758_s21  ;;  %1368 = vrot.lane.b32.xlu0 %v1814_v6, %s1758_s21 }
  0x3e   :  { %1463 = vrot.lane.b32.xlu1 %v1725_v8, %s1759_s24  ;;  %1461 = vrot.lane.b32.xlu0 %v1820_v7, %s1759_s24 }
  0x42   :  { %1555 = vrot.lane.b32.xlu1 %v1820_v7, %s1760_s25  ;;  %1459 = vrot.lane.b32.xlu0 %v1814_v6, %s1759_s24 }
  0x46   :  { %1553 = vrot.lane.b32.xlu1 %v1814_v6, %s1760_s25  ;;  %1557 = vrot.lane.b32.xlu0 %v1731_v10, %s1760_s25 }
  0x4a   :  { %834 = vperm.xlu0 %1748, %v831_v11   ;;  %1644 = vperm.xlu1 %1749, %v831_v11  }
  0x74   :  { %v190_v12 = vpop.permute.xlu1 %189  ;;  %v21_v13 = vpop.permute.xlu0 %20 }
  0x78   :  { %v192_v14 = vpop.permute.xlu1 %191  ;;  %v23_v15 = vpop.permute.xlu0 %22 }
  0x79   :  { %1657 = vmatprep.subr.msk.mxu0 %vm30_vm0, %v23_v15  ;;  %v25_v17 = vsel %vm24_vm2, %v21_v13, %v23_v15  ;;  %v194_v18 = vsel %vm193_vm3, %v190_v12, %v192_v14 }
  0x7a   :  { %1658 = vmatpush1.msk.msra.mxu0 %vm30_vm0, %v25_v17 }
  0x7b   :  { %1664 = vmatprep.subr.msk.mxu0 %vm30_vm0, %v192_v14  ;;  %1659 = vmatmul.mubr.msk.f32.vlgmr.msra.gmra.mxu0 %vm26_vm1, %v1860_v16 }
  0x7c   :  { %v283_v19 = vpop.permute.xlu1 %282  ;;  %1665 = vmatpush1.msk.msra.mxu0 %vm30_vm0, %v194_v18  ;;  %v281_v20 = vpop.permute.xlu0 %280  ;;  %266 = vmatprep.mubr.f32.mxu0 %v1752_v1 }
  0x7d   :  { %v285_v23 = vsel %vm284_vm4, %v281_v20, %v283_v19  ;;  %1668 = vmatprep.subr.msk.mxu1 %vm30_vm0, %v283_v19 }
  0x7e   :  { %1669 = vmatpush1.msk.msra.mxu1 %vm30_vm0, %v285_v23 }
  0x7f   :  { %1666 = vmatmul.mubr.msk.f32.vlgmr.msra.gmra.mxu0 %vm26_vm1, %v1874_v21  ;;  %1670 = vmatmul.mubr.msk.f32.vlgmr.msra.gmra.mxu1 %vm26_vm1, %v1879_v22 }
  0x80   :  { %v374_v24 = vpop.permute.xlu1 %373  ;;  %v372_v25 = vpop.permute.xlu0 %371  ;;  %448 = vmatprep.mubr.f32.mxu0 %v1752_v1  ;;  %539 = vmatprep.mubr.f32.mxu1 %v1752_v1 }
  0x81   :  { %v376_v27 = vsel %vm375_vm5, %v372_v25, %v374_v24  ;;  %1672 = vmatprep.subr.msk.mxu0 %vm30_vm0, %v374_v24 }
  0x82   :  { %1673 = vmatpush1.msk.msra.mxu0 %vm30_vm0, %v376_v27 }
  0x83   :  { %1674 = vmatmul.mubr.msk.f32.vlgmr.msra.gmra.mxu0 %vm26_vm1, %v1892_v26 }
  0x84   :  { %v465_v28 = vpop.permute.xlu1 %464  ;;  %v463_v29 = vpop.permute.xlu0 %462  ;;  %630 = vmatprep.mubr.f32.mxu0 %v1752_v1 }
  0x85   :  { %v467_v31 = vsel %vm466_vm6, %v463_v29, %v465_v28  ;;  %1676 = vmatprep.subr.msk.mxu1 %vm30_vm0, %v465_v28 }
  0x86   :  { %1677 = vmatpush1.msk.msra.mxu1 %vm30_vm0, %v467_v31 }
  0x87   :  { %1678 = vmatmul.mubr.msk.f32.vlgmr.msra.gmra.mxu1 %vm26_vm1, %v1903_v30 }
  0x88   :  { %v556_v32 = vpop.permute.xlu1 %555  ;;  %v554_v33 = vpop.permute.xlu0 %553  ;;  %726 = vmatprep.mubr.f32.mxu1 %v1752_v1 }
  0x89   :  { %v558_v35 = vsel %vm557_vm7, %v554_v33, %v556_v32  ;;  %1680 = vmatprep.subr.msk.mxu0 %vm30_vm0, %v556_v32 }
  0x8a   :  { %1681 = vmatpush1.msk.msra.mxu0 %vm30_vm0, %v558_v35 }
  0x8b   :  { %1682 = vmatmul.mubr.msk.f32.vlgmr.msra.gmra.mxu0 %vm26_vm1, %v1914_v34 }
  0x8c   :  { %v651_v36 = vpop.permute.xlu1 %650  ;;  %v649_v37 = vpop.permute.xlu0 %648  ;;  %822 = vmatprep.mubr.f32.mxu0 %v1752_v1 }
  0x8d   :  { %v654_v38 = vsel %vm652_vm8, %v649_v37, %v651_v36 }
  0x8e   :  { %1684 = vmatprep.subr.msk.mxu1 %vm30_vm0, %v654_v38 }
  0x90   :  { %v745_v39 = vpop.permute.xlu1 %744  ;;  %v647_v40 = vpop.permute.xlu0 %646 }
  0x91   :  { %v653_v42 = vsel %vm652_vm8, %v647_v40, %v649_v37 }
  0x92   :  { %1685 = vmatpush1.msk.msra.mxu1 %vm30_vm0, %v653_v42 }
  0x93   :  { %1686 = vmatmul.mubr.msk.f32.vlgmr.msra.gmra.mxu1 %vm26_vm1, %v1928_v41 }
  0x94   :  { %v743_v43 = vpop.permute.xlu1 %742  ;;  %v747_v44 = vpop.permute.xlu0 %746  ;;  %923 = vmatprep.mubr.f32.mxu1 %v1752_v1 }
  0x95   :  { %v749_v45 = vsel %vm748_vm9, %v743_v43, %v745_v39  ;;  %v750_v46 = vsel %vm748_vm9, %v745_v39, %v747_v44 }
  0x96   :  { %1688 = vmatprep.subr.msk.mxu0 %vm30_vm0, %v750_v46 }
  0x97   :  { %1689 = vmatpush1.msk.msra.mxu0 %vm30_vm0, %v749_v45 }
  0x98   :  { %v850_v48 = vpop.permute.xlu1 %849  ;;  %v848_v49 = vpop.permute.xlu0 %847  ;;  %1690 = vmatmul.mubr.msk.f32.vlgmr.msra.gmra.mxu0 %vm26_vm1, %v1940_v47  ;;  %1696 = vmatprep.subr.msk.mxu0 %vm30_vm0, %v1820_v7 }
  0x99   :  { %v851_v50 = vsel %vm24_vm2, %v848_v49, %v850_v48  ;;  %1693 = vmatprep.subr.msk.mxu1 %vm30_vm0, %v850_v48  ;;  %1697 = vmatpush1.msk.msra.mxu0 %vm30_vm0, %v1814_v6 }
  0x9a   :  { %1694 = vmatpush1.msk.msra.mxu1 %vm30_vm0, %v851_v50  ;;  %1001 = vmatprep.mubr.f32.mxu0 %v1752_v1 }
  0x9b   :  { %1695 = vmatmul.mubr.msk.f32.vlgmr.msra.gmra.mxu1 %vm26_vm1, %v1860_v16 }
  0x9c   :  { %v1015_v51 = vpop.permute.xlu1 %1014  ;;  %v1013_v52 = vpop.permute.xlu0 %1012  ;;  %1698 = vmatmul.mubr.msk.f32.vlgmr.msra.gmra.mxu0 %vm26_vm1, %v1793_v3  ;;  %1088 = vmatprep.mubr.f32.mxu1 %v1752_v1 }
  0x9d   :  { %v1016_v53 = vsel %vm193_vm3, %v1013_v52, %v1015_v51  ;;  %1701 = vmatprep.subr.msk.mxu1 %vm30_vm0, %v1015_v51  ;;  %1177 = vmatprep.mubr.f32.mxu0 %v1752_v1 }
  0x9e   :  { %1702 = vmatpush1.msk.msra.mxu1 %vm30_vm0, %v1016_v53 }
  0x9f   :  { %1703 = vmatmul.mubr.msk.f32.vlgmr.msra.gmra.mxu1 %vm26_vm1, %v1874_v21 }
  0xa0   :  { %v1104_v54 = vpop.permute.xlu1 %1103  ;;  %v1102_v55 = vpop.permute.xlu0 %1101  ;;  %1266 = vmatprep.mubr.f32.mxu1 %v1752_v1 }
  0xa1   :  { %v1105_v56 = vsel %vm284_vm4, %v1102_v55, %v1104_v54  ;;  %1706 = vmatprep.subr.msk.mxu0 %vm30_vm0, %v1104_v54 }
  0xa2   :  { %1707 = vmatpush1.msk.msra.mxu0 %vm30_vm0, %v1105_v56 }
  0xa3   :  { %1708 = vmatmul.mubr.msk.f32.vlgmr.msra.gmra.mxu0 %vm26_vm1, %v1879_v22 }
  0xa4   :  { %v1193_v57 = vpop.permute.xlu1 %1192  ;;  %v1191_v58 = vpop.permute.xlu0 %1190  ;;  %1355 = vmatprep.mubr.f32.mxu0 %v1752_v1 }
  0xa5   :  { %v1194_v59 = vsel %vm375_vm5, %v1191_v58, %v1193_v57  ;;  %1711 = vmatprep.subr.msk.mxu1 %vm30_vm0, %v1193_v57 }
  0xa6   :  { %1712 = vmatpush1.msk.msra.mxu1 %vm30_vm0, %v1194_v59 }
  0xa7   :  { %1713 = vmatmul.mubr.msk.f32.vlgmr.msra.gmra.mxu1 %vm26_vm1, %v1892_v26 }
  0xa8   :  { %v1282_v60 = vpop.permute.xlu1 %1281  ;;  %v1280_v61 = vpop.permute.xlu0 %1279  ;;  %1444 = vmatprep.mubr.f32.mxu1 %v1752_v1 }
  0xa9   :  { %v1283_v62 = vsel %vm466_vm6, %v1280_v61, %v1282_v60  ;;  %1716 = vmatprep.subr.msk.mxu0 %vm30_vm0, %v1282_v60 }
  0xaa   :  { %1717 = vmatpush1.msk.msra.mxu0 %vm30_vm0, %v1283_v62 }
  0xab   :  { %1718 = vmatmul.mubr.msk.f32.vlgmr.msra.gmra.mxu0 %vm26_vm1, %v1903_v30 }
  0xac   :  { %v1371_v63 = vpop.permute.xlu1 %1370  ;;  %v1369_v0 = vpop.permute.xlu0 %1368  ;;  %1538 = vmatprep.mubr.f32.mxu0 %v1752_v1 }
  0xad   :  { %v1372_v2 = vsel %vm557_vm7, %v1369_v0, %v1371_v63  ;;  %1721 = vmatprep.subr.msk.mxu1 %vm30_vm0, %v1371_v63 }
  0xae   :  { %1722 = vmatpush1.msk.msra.mxu1 %vm30_vm0, %v1372_v2 }
  0xaf   :  { %1723 = vmatmul.mubr.msk.f32.vlgmr.msra.gmra.mxu1 %vm26_vm1, %v1914_v34 }
  0xb0   :  { %v1464_v3 = vpop.permute.xlu1 %1463  ;;  %v1462_v4 = vpop.permute.xlu0 %1461  ;;  %1632 = vmatprep.mubr.f32.mxu1 %v1752_v1 }
  0xb1   :  { %v1466_v5 = vsel %vm652_vm8, %v1462_v4, %v1464_v3 }
  0xb2   :  { %1727 = vmatprep.subr.msk.mxu0 %vm30_vm0, %v1466_v5 }
  0xb4   :  { %v1556_v6 = vpop.permute.xlu1 %1555  ;;  %v1460_v7 = vpop.permute.xlu0 %1459 }
  0xb5   :  { %v1465_v8 = vsel %vm652_vm8, %v1460_v7, %v1462_v4 }
  0xb6   :  { %1728 = vmatpush1.msk.msra.mxu0 %vm30_vm0, %v1465_v8 }
  0xb7   :  { %1729 = vmatmul.mubr.msk.f32.vlgmr.msra.gmra.mxu0 %vm26_vm1, %v1928_v41 }
  0xb8   :  { %v1554_v9 = vpop.permute.xlu1 %1553  ;;  %v1558_v10 = vpop.permute.xlu0 %1557 }
  0xb9   :  { %v1559_v11 = vsel %vm748_vm9, %v1554_v9, %v1556_v6  ;;  %v1560_v12 = vsel %vm748_vm9, %v1556_v6, %v1558_v10 }
  0xba   :  { %1733 = vmatprep.subr.msk.mxu1 %vm30_vm0, %v1560_v12 }
  0xbb   :  { %1734 = vmatpush1.msk.msra.mxu1 %vm30_vm0, %v1559_v11 }
  0xbc   :  { %1735 = vmatmul.mubr.msk.f32.vlgmr.msra.gmra.mxu1 %vm26_vm1, %v1940_v47 }
  0xc5   :  { %v835_v43 = vpop.permute.xlu0 %834 }
  0xc7   :  { %v179_v1 = vpop.f32.mrf.mxu1 }
  0xc9   :  { %v181_v14 = vpop.f32.mrf.mxu1 }
 0x13b   :  { %v101_v13 = vpop.f32.mrf.mxu0 }
 0x13c   :  { %v180_v16 = vadd.f32 %v179_v1, %v101_v13 }
 0x13d   :  { %v103_v15 = vpop.f32.mrf.mxu0 }
 0x13e   :  { %v182_v17 = vadd.f32 %v181_v14, %v103_v15  ;;  %v1645_v15 = vpop.permute.xlu1 %1644 }
 0x13f   :  { %v268_v18 = vpop.f32.mrf.mxu0  ;;  %v359_v19 = vpop.f32.mrf.mxu1 }
 0x140   :  { %v273_v20 = vadd.f32 %v268_v18, %v180_v16 }
 0x141   :  { %v270_v21 = vpop.f32.mrf.mxu0  ;;  %v361_v23 = vpop.f32.mrf.mxu1 }
 0x142   :  { %v274_v22 = vadd.f32 %v270_v21, %v182_v17  ;;  %v364_v25 = vadd.f32 %v359_v19, %v273_v20 }
 0x143   :  { %v450_v24 = vpop.f32.mrf.mxu0 }
 0x144   :  { %v365_v26 = vadd.f32 %v361_v23, %v274_v22  ;;  %v455_v29 = vadd.f32 %v450_v24, %v364_v25 }
 0x145   :  { %v452_v27 = vpop.f32.mrf.mxu0 }
 0x146   :  { %v456_v30 = vadd.f32 %v452_v27, %v365_v26 }
 0x147   :  { %v541_v28 = vpop.f32.mrf.mxu1 }
 0x148   :  { %v546_v33 = vadd.f32 %v541_v28, %v455_v29 }
 0x149   :  { %v543_v31 = vpop.f32.mrf.mxu1 }
 0x14a   :  { %v547_v34 = vadd.f32 %v543_v31, %v456_v30 }
 0x14b   :  { %v632_v32 = vpop.f32.mrf.mxu0 }
 0x14c   :  { %v637_v36 = vadd.f32 %v632_v32, %v546_v33 }
 0x14d   :  { %v634_v35 = vpop.f32.mrf.mxu0 }
 0x14e   :  { %v638_v37 = vadd.f32 %v634_v35, %v547_v34 }
 0x153   :  { %v728_v38 = vpop.f32.mrf.mxu1 }
 0x154   :  { %v733_v39 = vadd.f32 %v728_v38, %v637_v36 }
 0x155   :  { %v730_v40 = vpop.f32.mrf.mxu1 }
 0x156   :  { %v734_v41 = vadd.f32 %v730_v40, %v638_v37 }
 0x158   :  { %v824_v42 = vpop.f32.mrf.mxu0 }
 0x159   :  { %v829_v44 = vadd.f32 %v824_v42, %v733_v39 }
 0x15a   :  { %v826_v45 = vpop.f32.mrf.mxu0 }
 0x15b   :  { %v830_v46 = vadd.f32 %v826_v45, %v734_v41  ;;  %v925_v47 = vpop.f32.mrf.mxu1  ;;  %v837_v48 = vadd.f32 %v835_v43, %v829_v44 }
 0x15c   :  { %v1003_v50 = vpop.f32.mrf.mxu0 }
 0x15d   :  { %v838_v49 = vadd.f32 %v835_v43, %v830_v46  ;;  %839 = vst [vmem:[%s2019_s3] sm:$0xff] %v837_v48  ;;  %v927_v51 = vpop.f32.mrf.mxu1  ;;  %v1004_v54 = vadd.f32 %v1003_v50, %v925_v47 }
 0x15e   :  { %v1005_v52 = vpop.f32.mrf.mxu0 }
 0x15f   :  { %840 = vst.msk [vmem:[%s2019_s3 + $0x8] sm:$0xff] %vm557_vm7, %v838_v49  ;;  %v1090_v53 = vpop.f32.mrf.mxu1  ;;  %v1006_v55 = vadd.f32 %v1005_v52, %v927_v51 }
 0x160   :  { %v1095_v58 = vadd.f32 %v1090_v53, %v1004_v54 }
 0x161   :  { %v1092_v56 = vpop.f32.mrf.mxu1 }
 0x162   :  { %v1096_v59 = vadd.f32 %v1092_v56, %v1006_v55 }
 0x163   :  { %v1179_v57 = vpop.f32.mrf.mxu0 }
 0x164   :  { %v1184_v62 = vadd.f32 %v1179_v57, %v1095_v58 }
 0x165   :  { %v1181_v60 = vpop.f32.mrf.mxu0 }
 0x166   :  { %v1185_v63 = vadd.f32 %v1181_v60, %v1096_v59 }
 0x167   :  { %v1268_v61 = vpop.f32.mrf.mxu1 }
 0x168   :  { %v1273_v3 = vadd.f32 %v1268_v61, %v1184_v62 }
 0x169   :  { %v1270_v0 = vpop.f32.mrf.mxu1 }
 0x16a   :  { %v1274_v4 = vadd.f32 %v1270_v0, %v1185_v63 }
 0x16b   :  { %v1357_v2 = vpop.f32.mrf.mxu0 }
 0x16c   :  { %v1362_v7 = vadd.f32 %v1357_v2, %v1273_v3 }
 0x16d   :  { %v1359_v5 = vpop.f32.mrf.mxu0 }
 0x16e   :  { %v1363_v8 = vadd.f32 %v1359_v5, %v1274_v4 }
 0x16f   :  { %v1446_v6 = vpop.f32.mrf.mxu1 }
 0x170   :  { %v1451_v10 = vadd.f32 %v1446_v6, %v1362_v7 }
 0x171   :  { %v1448_v9 = vpop.f32.mrf.mxu1 }
 0x172   :  { %v1452_v12 = vadd.f32 %v1448_v9, %v1363_v8 }
 0x177   :  { %v1540_v11 = vpop.f32.mrf.mxu0 }
 0x178   :  { %v1545_v13 = vadd.f32 %v1540_v11, %v1451_v10 }
 0x179   :  { %v1542_v1 = vpop.f32.mrf.mxu0 }
 0x17a   :  { %v1546_v16 = vadd.f32 %v1542_v1, %v1452_v12 }
 0x17c   :  { %v1634_v14 = vpop.f32.mrf.mxu1 }
 0x17d   :  { %v1639_v17 = vadd.f32 %v1634_v14, %v1545_v13 }
 0x17e   :  { %v1636_v18 = vpop.f32.mrf.mxu1 }
 0x17f   :  { %v1640_v19 = vadd.f32 %v1636_v18, %v1546_v16  ;;  %v1647_v20 = vadd.f32 %v1645_v15, %v1639_v17 }
 0x181   :  { %v1648_v21 = vadd.f32 %v1645_v15, %v1640_v19  ;;  %1736 = vst [vmem:[%s2019_s3 + $0x10] sm:$0xff] %v1647_v20 }
 0x183   :  { %1737 = vst.msk [vmem:[%s2019_s3 + $0x18] sm:$0xff] %vm557_vm7, %v1648_v21 }

</bundles_post_ra>
